<compile_context>
chip_gen: v5e
topology: v5e:2x2
jax: 0.10.0
libtpu: 0.0.40
codegen_flags: <defaults>
</compile_context>

<pallas_src>
import math
import functools

import jax
import jax.numpy as jnp
from jax import lax
from jax.experimental import pallas as pl
from jax.experimental.pallas import tpu as pltpu


_LRELU_ALPHA = 0.2
_LRELU_GAIN = math.sqrt(2.0)

# A[b, k] @ W[n, k]^T -> [b, n]: contract the last dims directly on the MXU;
# never materialize W.T (avoids an XLU transpose of the weight tile).
_DN_NT = (((1,), (1,)), ((), ()))


def _lrelu(x):
    # bias_act 'lrelu': leaky_relu(x, 0.2) * sqrt(2)
    return jnp.where(x >= 0, x, _LRELU_ALPHA * x) * _LRELU_GAIN


def _dot_nt(a, w, dtype):
    return lax.dot_general(a.astype(dtype), w.astype(dtype), _DN_NT,
                           preferred_element_type=jnp.float32)


def _mapping_kernel(*refs, z_dim, c_dim, w_dim, num_ws, lr_multiplier,
                    truncation_psi, cutoff, matmul_dtype):
    it = iter(refs)
    z_ref = next(it)
    if c_dim > 0:
        c_ref, ew_ref, eb_ref = next(it), next(it), next(it)
        w0z_ref, w0w_ref = next(it), next(it)
    else:
        w0z_ref = next(it)
    b0_ref, w1_ref, b1_ref = next(it), next(it), next(it)
    wavg_ref = next(it) if cutoff > 0 else None
    out_ref = next(it)

    f32 = jnp.float32
    tb = out_ref.shape[0]

    # --- normalize z: x = z * rsqrt(mean(z^2, axis=1) + 1e-8) ---
    z = z_ref[...].astype(f32)
    x = z * lax.rsqrt(jnp.mean(z * z, axis=1, keepdims=True) + 1e-8)

    # --- fc0 input: [x] or [x, embed(c) normalized] (fc0 weight pre-split) ---
    in0 = z_dim + (w_dim if c_dim > 0 else 0)
    h = _dot_nt(x, w0z_ref[...], matmul_dtype)
    if c_dim > 0:
        c = c_ref[...].astype(f32)
        # class embedding (linear FC, lr_mult=1); gain folded into the matmul output
        y = (_dot_nt(c, ew_ref[...], matmul_dtype) * (1.0 / math.sqrt(c_dim))
             + eb_ref[...].astype(f32))
        y = y * lax.rsqrt(jnp.mean(y * y, axis=1, keepdims=True) + 1e-8)
        h = h + _dot_nt(y, w0w_ref[...], matmul_dtype)

    # --- fc0 (lrelu) ---
    fc0_gain = (1.0 / math.sqrt(in0)) * lr_multiplier
    h = _lrelu(h * fc0_gain + b0_ref[...].astype(f32) * lr_multiplier)

    # --- fc1 (lrelu) ---
    fc1_gain = (1.0 / math.sqrt(w_dim)) * lr_multiplier
    h = _lrelu(_dot_nt(h, w1_ref[...], matmul_dtype) * fc1_gain
               + b1_ref[...].astype(f32) * lr_multiplier)

    # --- broadcast to num_ws + truncation: at most two static slice stores ---
    if cutoff > 0:
        # w_avg.lerp(h, psi) == h*psi + w_avg*(1-psi); the (1-psi) mul is on the
        # tiny (1, w_dim) row, not the (tb, w_dim) activations.
        trunc = (h * truncation_psi
                 + wavg_ref[...].astype(f32) * (1.0 - truncation_psi)
                 ).astype(out_ref.dtype)
        out_ref[:, :cutoff, :] = jnp.broadcast_to(trunc[:, None, :],
                                                  (tb, cutoff, w_dim))
    if cutoff < num_ws:
        h_out = h.astype(out_ref.dtype)
        out_ref[:, cutoff:, :] = jnp.broadcast_to(h_out[:, None, :],
                                                  (tb, num_ws - cutoff, w_dim))


def mapping_network_forward(z, c, params, *, num_ws, lr_multiplier=0.01,
                            truncation_psi=1.0, truncation_cutoff=None,
                            matmul_dtype=jnp.float32, batch_tile=256):
    """StyleGAN3 MappingNetwork.forward (num_layers=2) -> (batch, num_ws, w_dim) f32.

    matmul_dtype=jnp.bfloat16 runs the three matmuls on the bf16 MXU path
    (recommended on v6e/v7x; halves weight HBM/VMEM traffic). Normalization,
    gains, biases, lrelu and truncation stay in f32.
    truncation_psi / truncation_cutoff must be static Python values (inference use).
    """
    batch, z_dim = z.shape
    c_dim = 0 if c is None else c.shape[1]
    w_dim = params["fc1_w"].shape[0]

    # Static truncation config (matches torch: skipped entirely when psi == 1).
    cutoff = 0
    if float(truncation_psi) != 1.0:
        tc = num_ws if truncation_cutoff is None else int(truncation_cutoff)
        cutoff = max(0, min(tc, num_ws))

    # Batch grid: single block for small batches, else fixed "parallel" tiles
    # (pipelined; sharded across TensorCores on v7x). Pad so every block is full.
    # Per-block VMEM (tb=256, num_ws=16, w_dim=512, bf16 weights) stays well under
    # the default scoped limit (and v7x's 64 MiB physical VMEM).
    if batch <= batch_tile:
        tb, padded = batch, batch
    else:
        tb = batch_tile
        padded = pl.cdiv(batch, tb) * tb
    if padded != batch:
        z = jnp.pad(z, ((0, padded - batch), (0, 0)))
        if c_dim > 0:
            c = jnp.pad(c, ((0, padded - batch), (0, 0)))
    grid = (padded // tb,)

    wdt = matmul_dtype

    def const_spec(shape):
        return pl.BlockSpec(shape, lambda b, _s=len(shape): (0,) * _s)

    operands = [z]
    in_specs = [pl.BlockSpec((tb, z_dim), lambda b: (b, 0))]
    if c_dim > 0:
        operands += [c, params["embed_w"].astype(wdt), params["embed_b"]]
        in_specs += [pl.BlockSpec((tb, c_dim), lambda b: (b, 0)),
                     const_spec((w_dim, c_dim)), const_spec((1, w_dim))]
        # Pre-split fc0 weight columns (z part / embed part).
        operands += [params["fc0_w"][:, :z_dim].astype(wdt),
                     params["fc0_w"][:, z_dim:].astype(wdt)]
        in_specs += [const_spec((w_dim, z_dim)), const_spec((w_dim, w_dim))]
    else:
        operands += [params["fc0_w"].astype(wdt)]
        in_specs += [const_spec((w_dim, z_dim))]
    operands += [params["fc0_b"], params["fc1_w"].astype(wdt), params["fc1_b"]]
    in_specs += [const_spec((1, w_dim)), const_spec((w_dim, w_dim)),
                 const_spec((1, w_dim))]
    if cutoff > 0:
        operands += [params["w_avg"]]
        in_specs += [const_spec((1, w_dim))]

    kernel = functools.partial(
        _mapping_kernel,
        z_dim=z_dim, c_dim=c_dim, w_dim=w_dim, num_ws=num_ws,
        lr_multiplier=float(lr_multiplier),
        truncation_psi=float(truncation_psi),
        cutoff=int(cutoff),
        matmul_dtype=matmul_dtype)

    flops = 2 * padded * ((c_dim * w_dim if c_dim > 0 else 0)
                          + (z_dim + (w_dim if c_dim > 0 else 0)) * w_dim
                          + w_dim * w_dim)
    bytes_accessed = (sum(int(o.size) * o.dtype.itemsize for o in operands)
                      + padded * num_ws * w_dim * 4)
    cost = pl.CostEstimate(flops=flops,
                           transcendentals=padded * (2 if c_dim > 0 else 1),
                           bytes_accessed=bytes_accessed)

    out = pl.pallas_call(
        kernel,
        out_shape=jax.ShapeDtypeStruct((padded, num_ws, w_dim), jnp.float32),
        grid=grid,
        in_specs=in_specs,
        out_specs=pl.BlockSpec((tb, num_ws, w_dim), lambda b: (b, 0, 0)),
        compiler_params=pltpu.CompilerParams(dimension_semantics=("parallel",)),
        cost_estimate=cost,
    )(*operands)
    return out[:batch] if padded != batch else out


def init_params(key, z_dim, c_dim, w_dim, lr_multiplier=0.01):
    """Deterministic init mirroring MappingNetwork.__init__ (num_layers=2)."""
    k_e, k0, k1 = jax.random.split(key, 3)
    fc0_in = z_dim + (w_dim if c_dim > 0 else 0)
    params = {
        # fcN: weight_init=1, lr_multiplier -> randn / lr ; bias = 0/lr = 0
        "fc0_w": jax.random.normal(k0, (w_dim, fc0_in), jnp.float32) / lr_multiplier,
        "fc0_b": jnp.zeros((1, w_dim), jnp.float32),
        "fc1_w": jax.random.normal(k1, (w_dim, w_dim), jnp.float32) / lr_multiplier,
        "fc1_b": jnp.zeros((1, w_dim), jnp.float32),
        "w_avg": jnp.zeros((1, w_dim), jnp.float32),
    }
    if c_dim > 0:
        # embed: weight_init=1, lr_multiplier=1 -> randn ; bias = 0
        params["embed_w"] = jax.random.normal(k_e, (w_dim, c_dim), jnp.float32)
        params["embed_b"] = jnp.zeros((1, w_dim), jnp.float32)
    return params


def _reference_forward(z, c, params, *, num_ws, lr_multiplier=0.01,
                       truncation_psi=1.0, truncation_cutoff=None,
                       matmul_dtype=jnp.float32):
    """Pure-JAX reference used only for correctness checking."""
    if truncation_cutoff is None:
        truncation_cutoff = num_ws
    z_dim = z.shape[1]
    c_dim = 0 if c is None else c.shape[1]
    w_dim = params["fc1_w"].shape[0]

    def dot_nt(a, w):
        return lax.dot_general(a.astype(matmul_dtype), w.astype(matmul_dtype),
                               _DN_NT, preferred_element_type=jnp.float32,
                               precision=jax.lax.Precision.HIGHEST)

    x = z.astype(jnp.float32)
    x = x * lax.rsqrt(jnp.mean(x * x, axis=1, keepdims=True) + 1e-8)
    if c_dim > 0:
        y = (dot_nt(c.astype(jnp.float32), params["embed_w"]) / math.sqrt(c_dim)
             + params["embed_b"])
        y = y * lax.rsqrt(jnp.mean(y * y, axis=1, keepdims=True) + 1e-8)
        h = jnp.concatenate([x, y], axis=1)
        in0 = z_dim + w_dim
    else:
        h = x
        in0 = z_dim
    h = _lrelu(dot_nt(h, params["fc0_w"]) * ((1.0 / math.sqrt(in0)) * lr_multiplier)
               + params["fc0_b"] * lr_multiplier)
    h = _lrelu(dot_nt(h, params["fc1_w"]) * ((1.0 / math.sqrt(w_dim)) * lr_multiplier)
               + params["fc1_b"] * lr_multiplier)
    if truncation_psi != 1:
        trunc = params["w_avg"] + (h - params["w_avg"]) * truncation_psi
        cols = [trunc if i < int(truncation_cutoff) else h for i in range(num_ws)]
    else:
        cols = [h] * num_ws
    return jnp.stack(cols, axis=1)


if __name__ == "__main__":
    # Small shapes consistent with the module's forward (w_dim kept lane-dense).
    batch, z_dim, c_dim, w_dim, num_ws = 16, 64, 8, 128, 4
    lr_multiplier = 0.01

    key = jax.random.PRNGKey(0)
    kz, kc, kp, kw = jax.random.split(key, 4)
    z = jax.random.normal(kz, (batch, z_dim), jnp.float32)
    c = jax.random.normal(kc, (batch, c_dim), jnp.float32)
    params = init_params(kp, z_dim, c_dim, w_dim, lr_multiplier)
    # non-zero w_avg so the truncation lerp is actually exercised
    params["w_avg"] = 0.1 * jax.random.normal(kw, (1, w_dim), jnp.float32)

    # 1) f32, no truncation
    out = jax.block_until_ready(
        mapping_network_forward(z, c, params, num_ws=num_ws,
                                lr_multiplier=lr_multiplier, truncation_psi=1.0))
    ref = _reference_forward(z, c, params, num_ws=num_ws,
                             lr_multiplier=lr_multiplier, truncation_psi=1.0)
    assert out.shape == (batch, num_ws, w_dim)
    assert jnp.allclose(out, ref, atol=1e-4, rtol=1e-4), "f32 / psi=1 mismatch"

    # 2) f32, truncation psi=0.7, cutoff=2
    out = jax.block_until_ready(
        mapping_network_forward(z, c, params, num_ws=num_ws,
                                lr_multiplier=lr_multiplier,
                                truncation_psi=0.7, truncation_cutoff=2))
    ref = _reference_forward(z, c, params, num_ws=num_ws,
                             lr_multiplier=lr_multiplier,
                             truncation_psi=0.7, truncation_cutoff=2)
    assert jnp.allclose(out, ref, atol=1e-4, rtol=1e-4), "f32 / truncation mismatch"

    # 3) bf16 matmul fast path (v6e/v7x), with truncation on all ws
    out = jax.block_until_ready(
        mapping_network_forward(z, c, params, num_ws=num_ws,
                                lr_multiplier=lr_multiplier,
                                truncation_psi=0.7, truncation_cutoff=None,
                                matmul_dtype=jnp.bfloat16))
    ref = _reference_forward(z, c, params, num_ws=num_ws,
                             lr_multiplier=lr_multiplier,
                             truncation_psi=0.7, truncation_cutoff=None,
                             matmul_dtype=jnp.bfloat16)
    assert jnp.allclose(out, ref, atol=5e-3, rtol=5e-3), "bf16 mismatch"

    # 4) unconditional model (c_dim == 0): embedding skipped entirely
    params0 = init_params(kp, z_dim, 0, w_dim, lr_multiplier)
    out0 = jax.block_until_ready(
        mapping_network_forward(z, None, params0, num_ws=num_ws,
                                lr_multiplier=lr_multiplier, truncation_psi=1.0))
    ref0 = _reference_forward(z, None, params0, num_ws=num_ws,
                              lr_multiplier=lr_multiplier, truncation_psi=1.0)
    assert jnp.allclose(out0, ref0, atol=1e-4, rtol=1e-4), "c_dim=0 mismatch"

    # TODO(synk): update_emas (training-time in-place w_avg EMA buffer update) is
    # stateful and not implemented; w_avg is consumed read-only here.
    print("KERNEL_OK")
</pallas_src>

<mosaic_0001>
module attributes {stable_mosaic.version = 11 : i64} {
  func.func @_mapping_kernel(%arg0: i32, %arg1: memref<16x64xf32, #tpu.memory_space<vmem>>, %arg2: memref<16x8xf32, #tpu.memory_space<vmem>>, %arg3: memref<128x8xf32, #tpu.memory_space<vmem>>, %arg4: memref<1x128xf32, #tpu.memory_space<vmem>>, %arg5: memref<128x64xf32, #tpu.memory_space<vmem>>, %arg6: memref<128x128xf32, #tpu.memory_space<vmem>>, %arg7: memref<1x128xf32, #tpu.memory_space<vmem>>, %arg8: memref<128x128xf32, #tpu.memory_space<vmem>>, %arg9: memref<1x128xf32, #tpu.memory_space<vmem>>, %arg10: memref<16x4x128xf32, #tpu.memory_space<vmem>>) attributes {dimension_semantics = [#tpu.dimension_semantics<parallel>], iteration_bounds = array<i64: 1>, scalar_prefetch = 0 : i64, scratch_operands = 0 : i64, tpu.core_type = #tpu.core_type<tc>, window_params = [{transform_indices = @transform_0, window_bounds = array<i64: 16, 64>}, {transform_indices = @transform_1, window_bounds = array<i64: 16, 8>}, {pipeline_mode = #tpu.pipeline_mode<synchronous>, transform_indices = @transform_2, window_bounds = array<i64: 128, 8>}, {pipeline_mode = #tpu.pipeline_mode<synchronous>, transform_indices = @transform_3, window_bounds = array<i64: 1, 128>}, {pipeline_mode = #tpu.pipeline_mode<synchronous>, transform_indices = @transform_4, window_bounds = array<i64: 128, 64>}, {pipeline_mode = #tpu.pipeline_mode<synchronous>, transform_indices = @transform_5, window_bounds = array<i64: 128, 128>}, {pipeline_mode = #tpu.pipeline_mode<synchronous>, transform_indices = @transform_6, window_bounds = array<i64: 1, 128>}, {pipeline_mode = #tpu.pipeline_mode<synchronous>, transform_indices = @transform_7, window_bounds = array<i64: 128, 128>}, {pipeline_mode = #tpu.pipeline_mode<synchronous>, transform_indices = @transform_8, window_bounds = array<i64: 1, 128>}, {transform_indices = @transform_9, window_bounds = array<i64: 16, 4, 128>}]} {
    %c0 = arith.constant 0 : index
    %c0_0 = arith.constant 0 : index
    %0 = vector.load %arg1[%c0, %c0_0] : memref<16x64xf32, #tpu.memory_space<vmem>>, vector<16x64xf32>
    %1 = arith.mulf %0, %0 : vector<16x64xf32>
    %cst = arith.constant dense<0.000000e+00> : vector<16xf32>
    %2 = vector.multi_reduction <add>, %1, %cst [1] : vector<16x64xf32> to vector<16xf32>
    %3 = vector.shape_cast %2 : vector<16xf32> to vector<16x1xf32>
    %cst_1 = arith.constant 6.400000e+01 : f32
    %4 = vector.broadcast %cst_1 : f32 to vector<16x1xf32>
    %5 = arith.divf %3, %4 : vector<16x1xf32>
    %cst_2 = arith.constant 9.99999993E-9 : f32
    %6 = vector.broadcast %cst_2 : f32 to vector<16x1xf32>
    %7 = arith.addf %5, %6 : vector<16x1xf32>
    %8 = math.rsqrt %7 : vector<16x1xf32>
    %9 = vector.broadcast %8 : vector<16x1xf32> to vector<16x64xf32>
    %10 = arith.mulf %0, %9 : vector<16x64xf32>
    %c0_3 = arith.constant 0 : index
    %c0_4 = arith.constant 0 : index
    %11 = vector.load %arg5[%c0_3, %c0_4] : memref<128x64xf32, #tpu.memory_space<vmem>>, vector<128x64xf32>
    %cst_5 = arith.constant dense<0.000000e+00> : vector<16x128xf32>
    %12 = tpu.matmul %10, %11, %cst_5 {dimension_numbers = #tpu.dot_dimension_numbers<[1], [1], [0], [0], [0, 0, 1, 0], [], []>} : vector<16x64xf32>, vector<128x64xf32>, vector<16x128xf32> -> vector<16x128xf32>
    %c0_6 = arith.constant 0 : index
    %c0_7 = arith.constant 0 : index
    %13 = vector.load %arg2[%c0_6, %c0_7] : memref<16x8xf32, #tpu.memory_space<vmem>>, vector<16x8xf32>
    %c0_8 = arith.constant 0 : index
    %c0_9 = arith.constant 0 : index
    %14 = vector.load %arg3[%c0_8, %c0_9] : memref<128x8xf32, #tpu.memory_space<vmem>>, vector<128x8xf32>
    %cst_10 = arith.constant dense<0.000000e+00> : vector<16x128xf32>
    %15 = tpu.matmul %13, %14, %cst_10 {dimension_numbers = #tpu.dot_dimension_numbers<[1], [1], [0], [0], [0, 0, 1, 0], [], []>} : vector<16x8xf32>, vector<128x8xf32>, vector<16x128xf32> -> vector<16x128xf32>
    %cst_11 = arith.constant 0.353553385 : f32
    %16 = vector.broadcast %cst_11 : f32 to vector<16x128xf32>
    %17 = arith.mulf %15, %16 : vector<16x128xf32>
    %c0_12 = arith.constant 0 : index
    %c0_13 = arith.constant 0 : index
    %18 = vector.load %arg4[%c0_12, %c0_13] : memref<1x128xf32, #tpu.memory_space<vmem>>, vector<1x128xf32>
    %19 = vector.broadcast %18 : vector<1x128xf32> to vector<16x128xf32>
    %20 = arith.addf %17, %19 : vector<16x128xf32>
    %21 = arith.mulf %20, %20 : vector<16x128xf32>
    %cst_14 = arith.constant dense<0.000000e+00> : vector<16xf32>
    %22 = vector.multi_reduction <add>, %21, %cst_14 [1] : vector<16x128xf32> to vector<16xf32>
    %23 = vector.shape_cast %22 : vector<16xf32> to vector<16x1xf32>
    %cst_15 = arith.constant 1.280000e+02 : f32
    %24 = vector.broadcast %cst_15 : f32 to vector<16x1xf32>
    %25 = arith.divf %23, %24 : vector<16x1xf32>
    %cst_16 = arith.constant 9.99999993E-9 : f32
    %26 = vector.broadcast %cst_16 : f32 to vector<16x1xf32>
    %27 = arith.addf %25, %26 : vector<16x1xf32>
    %28 = math.rsqrt %27 : vector<16x1xf32>
    %29 = vector.broadcast %28 : vector<16x1xf32> to vector<16x128xf32>
    %30 = arith.mulf %20, %29 : vector<16x128xf32>
    %c0_17 = arith.constant 0 : index
    %c0_18 = arith.constant 0 : index
    %31 = vector.load %arg6[%c0_17, %c0_18] : memref<128x128xf32, #tpu.memory_space<vmem>>, vector<128x128xf32>
    %cst_19 = arith.constant dense<0.000000e+00> : vector<16x128xf32>
    %32 = tpu.matmul %30, %31, %cst_19 {dimension_numbers = #tpu.dot_dimension_numbers<[1], [1], [0], [0], [0, 0, 1, 0], [], []>} : vector<16x128xf32>, vector<128x128xf32>, vector<16x128xf32> -> vector<16x128xf32>
    %33 = arith.addf %12, %32 : vector<16x128xf32>
    %cst_20 = arith.constant 7.21687858E-4 : f32
    %34 = vector.broadcast %cst_20 : f32 to vector<16x128xf32>
    %35 = arith.mulf %33, %34 : vector<16x128xf32>
    %c0_21 = arith.constant 0 : index
    %c0_22 = arith.constant 0 : index
    %36 = vector.load %arg7[%c0_21, %c0_22] : memref<1x128xf32, #tpu.memory_space<vmem>>, vector<1x128xf32>
    %cst_23 = arith.constant 0.00999999977 : f32
    %37 = vector.broadcast %cst_23 : f32 to vector<1x128xf32>
    %38 = arith.mulf %36, %37 : vector<1x128xf32>
    %39 = vector.broadcast %38 : vector<1x128xf32> to vector<16x128xf32>
    %40 = arith.addf %35, %39 : vector<16x128xf32>
    %cst_24 = arith.constant 0.000000e+00 : f32
    %41 = vector.broadcast %cst_24 : f32 to vector<16x128xf32>
    %42 = arith.cmpf oge, %40, %41 : vector<16x128xf32>
    %cst_25 = arith.constant 2.000000e-01 : f32
    %43 = vector.broadcast %cst_25 : f32 to vector<16x128xf32>
    %44 = arith.mulf %43, %40 : vector<16x128xf32>
    %45 = arith.select %42, %40, %44 : vector<16x128xi1>, vector<16x128xf32>
    %cst_26 = arith.constant 1.41421354 : f32
    %46 = vector.broadcast %cst_26 : f32 to vector<16x128xf32>
    %47 = arith.mulf %45, %46 : vector<16x128xf32>
    %c0_27 = arith.constant 0 : index
    %c0_28 = arith.constant 0 : index
    %48 = vector.load %arg8[%c0_27, %c0_28] : memref<128x128xf32, #tpu.memory_space<vmem>>, vector<128x128xf32>
    %cst_29 = arith.constant dense<0.000000e+00> : vector<16x128xf32>
    %49 = tpu.matmul %47, %48, %cst_29 {dimension_numbers = #tpu.dot_dimension_numbers<[1], [1], [0], [0], [0, 0, 1, 0], [], []>} : vector<16x128xf32>, vector<128x128xf32>, vector<16x128xf32> -> vector<16x128xf32>
    %cst_30 = arith.constant 8.83883447E-4 : f32
    %50 = vector.broadcast %cst_30 : f32 to vector<16x128xf32>
    %51 = arith.mulf %49, %50 : vector<16x128xf32>
    %c0_31 = arith.constant 0 : index
    %c0_32 = arith.constant 0 : index
    %52 = vector.load %arg9[%c0_31, %c0_32] : memref<1x128xf32, #tpu.memory_space<vmem>>, vector<1x128xf32>
    %cst_33 = arith.constant 0.00999999977 : f32
    %53 = vector.broadcast %cst_33 : f32 to vector<1x128xf32>
    %54 = arith.mulf %52, %53 : vector<1x128xf32>
    %55 = vector.broadcast %54 : vector<1x128xf32> to vector<16x128xf32>
    %56 = arith.addf %51, %55 : vector<16x128xf32>
    %cst_34 = arith.constant 0.000000e+00 : f32
    %57 = vector.broadcast %cst_34 : f32 to vector<16x128xf32>
    %58 = arith.cmpf oge, %56, %57 : vector<16x128xf32>
    %cst_35 = arith.constant 2.000000e-01 : f32
    %59 = vector.broadcast %cst_35 : f32 to vector<16x128xf32>
    %60 = arith.mulf %59, %56 : vector<16x128xf32>
    %61 = arith.select %58, %56, %60 : vector<16x128xi1>, vector<16x128xf32>
    %cst_36 = arith.constant 1.41421354 : f32
    %62 = vector.broadcast %cst_36 : f32 to vector<16x128xf32>
    %63 = arith.mulf %61, %62 : vector<16x128xf32>
    %64 = vector.shape_cast %63 : vector<16x128xf32> to vector<16x1x128xf32>
    %65 = vector.shape_cast %64 : vector<16x1x128xf32> to vector<16x1x128xf32>
    %66 = vector.broadcast %65 : vector<16x1x128xf32> to vector<16x4x128xf32>
    %c0_37 = arith.constant 0 : index
    %c0_38 = arith.constant 0 : index
    %c0_39 = arith.constant 0 : index
    %67 = vector.load %arg10[%c0_37, %c0_38, %c0_39] : memref<16x4x128xf32, #tpu.memory_space<vmem>>, vector<16x4x128xf32>
    tpu.vector_store %arg10[%c0_37, %c0_38, %c0_39], %66 {strides = array<i32>} : memref<16x4x128xf32, #tpu.memory_space<vmem>>, vector<16x4x128xf32>,
    return
  }
  func.func @transform_0(%arg0: i32) -> (i32, i32) {
    %c0_i32 = arith.constant 0 : i32
    %c0_i32_0 = arith.constant 0 : i32
    return %arg0, %c0_i32 : i32, i32
  }
  func.func @transform_1(%arg0: i32) -> (i32, i32) {
    %c0_i32 = arith.constant 0 : i32
    %c0_i32_0 = arith.constant 0 : i32
    return %arg0, %c0_i32 : i32, i32
  }
  func.func @transform_2(%arg0: i32) -> (i32, i32) {
    %c0_i32 = arith.constant 0 : i32
    %c0_i32_0 = arith.constant 0 : i32
    %c0_i32_1 = arith.constant 0 : i32
    return %c0_i32, %c0_i32_0 : i32, i32
  }
  func.func @transform_3(%arg0: i32) -> (i32, i32) {
    %c0_i32 = arith.constant 0 : i32
    %c0_i32_0 = arith.constant 0 : i32
    %c0_i32_1 = arith.constant 0 : i32
    return %c0_i32, %c0_i32_0 : i32, i32
  }
  func.func @transform_4(%arg0: i32) -> (i32, i32) {
    %c0_i32 = arith.constant 0 : i32
    %c0_i32_0 = arith.constant 0 : i32
    %c0_i32_1 = arith.constant 0 : i32
    return %c0_i32, %c0_i32_0 : i32, i32
  }
  func.func @transform_5(%arg0: i32) -> (i32, i32) {
    %c0_i32 = arith.constant 0 : i32
    %c0_i32_0 = arith.constant 0 : i32
    %c0_i32_1 = arith.constant 0 : i32
    return %c0_i32, %c0_i32_0 : i32, i32
  }
  func.func @transform_6(%arg0: i32) -> (i32, i32) {
    %c0_i32 = arith.constant 0 : i32
    %c0_i32_0 = arith.constant 0 : i32
    %c0_i32_1 = arith.constant 0 : i32
    return %c0_i32, %c0_i32_0 : i32, i32
  }
  func.func @transform_7(%arg0: i32) -> (i32, i32) {
    %c0_i32 = arith.constant 0 : i32
    %c0_i32_0 = arith.constant 0 : i32
    %c0_i32_1 = arith.constant 0 : i32
    return %c0_i32, %c0_i32_0 : i32, i32
  }
  func.func @transform_8(%arg0: i32) -> (i32, i32) {
    %c0_i32 = arith.constant 0 : i32
    %c0_i32_0 = arith.constant 0 : i32
    %c0_i32_1 = arith.constant 0 : i32
    return %c0_i32, %c0_i32_0 : i32, i32
  }
  func.func @transform_9(%arg0: i32) -> (i32, i32, i32) {
    %c0_i32 = arith.constant 0 : i32
    %c0_i32_0 = arith.constant 0 : i32
    %c0_i32_1 = arith.constant 0 : i32
    return %arg0, %c0_i32, %c0_i32_0 : i32, i32, i32
  }
}

</mosaic_0001>

<bundles_post_ra>
// kernel: tpu_custom_call.1
= control target key start
LH: loop header
LB: loop body
LE: loop exit
PB: predicated region body
PF: predicated region fallthrough
CT: control target
= control target key end

     0   :  { %vm111_vm0 = vcmask 64512   ;;  %s916_s0 = inlined_call_operand.vmem [shape: f32[16,64], index: 0, kind: input, shape index: {}]   ;;  %s917_s1 = inlined_call_operand.vmem [shape: f32[16,8], index: 1, kind: input, shape index: {}]   ;;  %s918_s2 = inlined_call_operand.vmem [shape: f32[128,8], index: 2, kind: input, shape index: {}]   ;;  %s919_s3 = inlined_call_operand.vmem [shape: f32[1,128], index: 3, kind: input, shape index: {}]   ;;  %s920_s4 = inlined_call_operand.vmem [shape: f32[128,64], index: 4, kind: input, shape index: {}]   ;;  %s921_s5 = inlined_call_operand.vmem [shape: f32[128,128], index: 5, kind: input, shape index: {}]   ;;  %s922_s6 = inlined_call_operand.vmem [shape: f32[1,128], index: 6, kind: input, shape index: {}]   ;;  %s923_s7 = inlined_call_operand.vmem [shape: f32[128,128], index: 7, kind: input, shape index: {}]   ;;  %s924_s8 = inlined_call_operand.vmem [shape: f32[1,128], index: 8, kind: input, shape index: {}]   ;;  %s925_s9 = inlined_call_operand.hbm [shape: f32[16,4,128], index: 9, kind: output, shape index: {}]  }
   0x1   :  { %v110_v0 = vld [vmem:[%s918_s2 + $0x78] sm:$0xff]  ;;  %v109_v1 = vld [vmem:[%s918_s2 + $0x70] sm:$0xff] }
   0x2   :  { %507 = vmatpush.xpose.msk.msra.mxu0 %vm111_vm0, %v110_v0 }
   0x3   :  { %14 = vsyncpa [#allocation3], 0  ;;  %v108_v2 = vld [vmem:[%s918_s2 + $0x68] sm:$0xff]  ;;  %v107_v3 = vld [vmem:[%s918_s2 + $0x60] sm:$0xff]  ;;  %vm37_vm1 = vcmask 523264   ;;  %v587_v55 = vmov 64.0  }
   0x4   :  { %v106_v4 = vld [vmem:[%s918_s2 + $0x58] sm:$0xff]  ;;  %v105_v5 = vld [vmem:[%s918_s2 + $0x50] sm:$0xff]  ;;  %v104_v6 = vld [vmem:[%s918_s2 + $0x48] sm:$0xff]  ;;  %549 = vrcp.f32 %v587_v55  ;;  %s495_s27 = sshll.u32 %s925_s9, 4  ;;  %s590_s28 = smov 64   ;;  %s496_s27 = int_to_ptr.hbm [resolvable:$true] %s495_s27 }
   0x5   :  { %v103_v7 = vld [vmem:[%s918_s2 + $0x40] sm:$0xff]  ;;  %v102_v8 = vld [vmem:[%s918_s2 + $0x38] sm:$0xff]  ;;  %v101_v9 = vld [vmem:[%s918_s2 + $0x30] sm:$0xff] }
   0x6   :  { %508 = vmatpush.xpose.msk.msra.mxu0 %vm111_vm0, %v109_v1  ;;  %v100_v10 = vld [vmem:[%s918_s2 + $0x28] sm:$0xff]  ;;  %v688_v11 = vld [vmem:[%s916_s0] sm:$0xff]  ;;  %v98_v18 = vld [vmem:[%s918_s2 + $0x18] sm:$0xff] }
   0x7   :  { %v693_v12 = vld [vmem:[%s916_s0 + $0x8] sm:$0xff]  ;;  %v35_v13 = vmul.f32 %v688_v11, %v688_v11  ;;  %v99_v15 = vld [vmem:[%s918_s2 + $0x20] sm:$0xff]  ;;  %v97_v19 = vld [vmem:[%s918_s2 + $0x10] sm:$0xff] }
   0x8   :  { %v36_v14 = vmul.f32 %v693_v12, %v693_v12  ;;  %v96_v20 = vld [vmem:[%s918_s2 + $0x8] sm:$0xff]  ;;  %v95_v21 = vld [vmem:[%s918_s2] sm:$0xff]  ;;  %v92_v24 = vld [vmem:[%s920_s4 + $0x78] sm:$0xff] }
   0x9   :  { %v38_v16 = vsel %vm37_vm1, %v35_v13, 0.0  ;;  %v93_v22 = vld [vmem:[%s917_s1] sm:$0xff]  ;;  %v94_v23 = vld [vmem:[%s917_s1 + $0x8] sm:$0xff]  ;;  %525 = vmatpush.xpose.msk.msra.mxu2 %vm37_vm1, %v92_v24  ;;  %v91_v25 = vld [vmem:[%s920_s4 + $0x70] sm:$0xff]  ;;  %v588_v24 = vmov 128.0  }
   0xa   :  { %509 = vmatpush.xpose.msk.msra.mxu0 %vm111_vm0, %v108_v2  ;;  %v41_v17 = vsel %vm37_vm1, %v36_v14, 0.0  ;;  %39 = vadd.xlane.f32.xlu0 %v38_v16  ;;  %v251_v26 = vld [vmem:[%s921_s5 + $0x78] sm:$0xff]  ;;  %v250_v27 = vld [vmem:[%s921_s5 + $0x70] sm:$0xff]  ;;  %v90_v28 = vld [vmem:[%s920_s4 + $0x68] sm:$0xff]  ;;  %v550_v57 = vpop.eup %549 }
   0xb   :  { %42 = vadd.xlane.f32.xlu1 %v41_v17  ;;  %252 = vmatpush.xpose.msra.mxu1 %v251_v26  ;;  %v249_v29 = vld [vmem:[%s921_s5 + $0x68] sm:$0xff]  ;;  %v89_v30 = vld [vmem:[%s920_s4 + $0x60] sm:$0xff]  ;;  %v88_v32 = vld [vmem:[%s920_s4 + $0x58] sm:$0xff]  ;;  %v45_v59 = vmul.f32 64.0, %v550_v57  ;;  %vm49_vm2 = vweird.f32 %v550_v57 }
   0xc   :  { %v248_v31 = vld [vmem:[%s921_s5 + $0x60] sm:$0xff]  ;;  %v247_v34 = vld [vmem:[%s921_s5 + $0x58] sm:$0xff]  ;;  %v87_v37 = vld [vmem:[%s920_s4 + $0x50] sm:$0xff] }
   0xd   :  { %526 = vmatpush.xpose.msk.msra.mxu2 %vm37_vm1, %v91_v25  ;;  %v548_v33 = vld [vmem:[%s919_s3] ss:$0 sm:$0xff]  ;;  %v246_v39 = vld [vmem:[%s921_s5 + $0x50] sm:$0xff]  ;;  %v86_v41 = vld [vmem:[%s920_s4 + $0x48] sm:$0xff]  ;;  %v46_v61 = vsub.f32 1.0, %v45_v59  ;;  %s591_s3 = smov 4  }
   0xe   :  { %510 = vmatpush.xpose.msk.msra.mxu0 %vm111_vm0, %v107_v3  ;;  %v245_v42 = vld [vmem:[%s921_s5 + $0x48] sm:$0xff]  ;;  %v85_v45 = vld [vmem:[%s920_s4 + $0x40] sm:$0xff]  ;;  %v84_v49 = vld [vmem:[%s920_s4 + $0x38] sm:$0xff] }
   0xf   :  { %253 = vmatpush.xpose.msra.mxu1 %v250_v27  ;;  %v244_v47 = vld [vmem:[%s921_s5 + $0x40] sm:$0xff]  ;;  %v243_v50 = vld [vmem:[%s921_s5 + $0x38] sm:$0xff]  ;;  %v83_v51 = vld [vmem:[%s920_s4 + $0x30] sm:$0xff]  ;;  %v47_v63 = vmul.f32 %v550_v57, %v46_v61 }
  0x10   :  { %v242_v52 = vld [vmem:[%s921_s5 + $0x30] sm:$0xff]  ;;  %v82_v53 = vld [vmem:[%s920_s4 + $0x28] sm:$0xff]  ;;  %v81_v54 = vld [vmem:[%s920_s4 + $0x20] sm:$0xff] }
  0x11   :  { %527 = vmatpush.xpose.msk.msra.mxu2 %vm37_vm1, %v90_v28  ;;  %v80_v56 = vld [vmem:[%s920_s4 + $0x18] sm:$0xff]  ;;  %v79_v58 = vld [vmem:[%s920_s4 + $0x10] sm:$0xff]  ;;  %v78_v60 = vld [vmem:[%s920_s4 + $0x8] sm:$0xff]  ;;  %v48_v0 = vadd.f32 %v550_v57, %v47_v63 }
  0x12   :  { %511 = vmatpush.xpose.msk.msra.mxu0 %vm111_vm0, %v106_v4  ;;  %v77_v62 = vld [vmem:[%s920_s4] sm:$0xff]  ;;  %v239_v28 = vld [vmem:[%s921_s5 + $0x18] sm:$0xff] }
  0x13   :  { %254 = vmatpush.xpose.msra.mxu1 %v249_v29  ;;  %v50_v1 = vsel %vm49_vm2, %v550_v57, %v48_v0  ;;  %v240_v25 = vld [vmem:[%s921_s5 + $0x20] sm:$0xff] }
  0x15   :  { %528 = vmatpush.xpose.msk.msra.mxu2 %vm37_vm1, %v89_v30  ;;  %v238_v30 = vld [vmem:[%s921_s5 + $0x10] sm:$0xff] }
  0x16   :  { %512 = vmatpush.xpose.msk.msra.mxu0 %vm111_vm0, %v105_v5 }
  0x17   :  { %255 = vmatpush.xpose.msra.mxu1 %v248_v31 }
  0x19   :  { %529 = vmatpush.xpose.msk.msra.mxu2 %vm37_vm1, %v88_v32  ;;  %v237_v32 = vld [vmem:[%s921_s5 + $0x8] sm:$0xff] }
  0x1a   :  { %513 = vmatpush.xpose.msk.msra.mxu0 %vm111_vm0, %v104_v6 }
  0x1b   :  { %256 = vmatpush.xpose.msra.mxu1 %v247_v34 }
  0x1d   :  { %530 = vmatpush.xpose.msk.msra.mxu2 %vm37_vm1, %v87_v37 }
  0x1e   :  { %514 = vmatpush.xpose.msk.msra.mxu0 %vm111_vm0, %v103_v7 }
  0x1f   :  { %257 = vmatpush.xpose.msra.mxu1 %v246_v39 }
  0x21   :  { %531 = vmatpush.xpose.msk.msra.mxu2 %vm37_vm1, %v86_v41 }
  0x22   :  { %515 = vmatpush.xpose.msk.msra.mxu0 %vm111_vm0, %v102_v8 }
  0x23   :  { %258 = vmatpush.xpose.msra.mxu1 %v245_v42  ;;  %v383_v42 = vld [vmem:[%s923_s7 + $0x70] sm:$0xff] }
  0x25   :  { %532 = vmatpush.xpose.msk.msra.mxu2 %vm37_vm1, %v85_v45 }
  0x26   :  { %516 = vmatpush.xpose.msk.msra.mxu0 %vm111_vm0, %v101_v9 }
  0x27   :  { %259 = vmatpush.xpose.msra.mxu1 %v244_v47 }
  0x29   :  { %533 = vmatpush.xpose.msk.msra.mxu2 %vm37_vm1, %v84_v49  ;;  %v381_v49 = vld [vmem:[%s923_s7 + $0x60] sm:$0xff] }
  0x2a   :  { %517 = vmatpush.xpose.msk.msra.mxu0 %vm111_vm0, %v100_v10 }
  0x2b   :  { %260 = vmatpush.xpose.msra.mxu1 %v243_v50 }
  0x2d   :  { %534 = vmatpush.xpose.msk.msra.mxu2 %vm37_vm1, %v83_v51 }
  0x2e   :  { %518 = vmatpush.xpose.msk.msra.mxu0 %vm111_vm0, %v99_v15 }
  0x2f   :  { %261 = vmatpush.xpose.msra.mxu1 %v242_v52  ;;  %v380_v52 = vld [vmem:[%s923_s7 + $0x58] sm:$0xff] }
  0x31   :  { %535 = vmatpush.xpose.msk.msra.mxu2 %vm37_vm1, %v82_v53 }
  0x32   :  { %519 = vmatpush.xpose.msk.msra.mxu0 %vm111_vm0, %v98_v18 }
  0x35   :  { %536 = vmatpush.xpose.msk.msra.mxu2 %vm37_vm1, %v81_v54 }
  0x36   :  { %520 = vmatpush.xpose.msk.msra.mxu0 %vm111_vm0, %v97_v19 }
  0x39   :  { %537 = vmatpush.xpose.msk.msra.mxu2 %vm37_vm1, %v80_v56  ;;  %v379_v56 = vld [vmem:[%s923_s7 + $0x50] sm:$0xff] }
  0x3a   :  { %521 = vmatpush.xpose.msk.msra.mxu0 %vm111_vm0, %v96_v20 }
  0x3d   :  { %538 = vmatpush.xpose.msk.msra.mxu2 %vm37_vm1, %v79_v58 }
  0x3e   :  { %522 = vmatpush.xpose.msk.msra.mxu0 %vm111_vm0, %v95_v21 }
  0x41   :  { %523 = vmatmul.msk.f32.vlgmr.msra.gmra.mxu0 %vm111_vm0, %v93_v22  ;;  %539 = vmatpush.xpose.msk.msra.mxu2 %vm37_vm1, %v78_v60 }
  0x45   :  { %540 = vmatpush.xpose.msk.msra.mxu2 %vm37_vm1, %v77_v62  ;;  %v378_v62 = vld [vmem:[%s923_s7 + $0x48] sm:$0xff] }
  0x49   :  { %524 = vmatmul.msk.f32.gmra.mxu0 %vm111_vm0, %v94_v23  ;;  %v241_v23 = vld [vmem:[%s921_s5 + $0x28] sm:$0xff] }
  0x4a   :  { %262 = vmatpush.xpose.msra.mxu1 %v241_v23 }
  0x4e   :  { %263 = vmatpush.xpose.msra.mxu1 %v240_v25 }
  0x52   :  { %264 = vmatpush.xpose.msra.mxu1 %v239_v28 }
  0x56   :  { %265 = vmatpush.xpose.msra.mxu1 %v238_v30 }
  0x5a   :  { %266 = vmatpush.xpose.msra.mxu1 %v237_v32 }
  0x7d   :  { %v40_v2 = vpop.xlane.xlu0 %39 }
  0x7e   :  { %v51_v3 = vmul.f32 %v50_v1, %v40_v2  ;;  %v43_v5 = vpop.xlane.xlu1 %42 }
  0x7f   :  { %v52_v6 = vmul.f32 %v50_v1, %v43_v5  ;;  %v377_v1 = vld [vmem:[%s923_s7 + $0x40] sm:$0xff]  ;;  %v375_v5 = vld [vmem:[%s923_s7 + $0x30] sm:$0xff] }
  0x80   :  { %v53_v4 = vadd.f32 1e-08, %v51_v3 }
  0x81   :  { %v54_v7 = vadd.f32 1e-08, %v52_v6  ;;  %v374_v6 = vld [vmem:[%s923_s7 + $0x28] sm:$0xff] }
  0x82   :  { %551 = vrsqrt.f32 %v53_v4  ;;  %vm61_vm3 = vweird.f32 %v53_v4 }
  0x83   :  { %553 = vrsqrt.f32 %v54_v7  ;;  %vm71_vm6 = vweird.f32 %v54_v7 }
  0x84   :  { %555 = vrcp.f32 %v588_v24 }
  0x88   :  { %v552_v8 = vpop.eup %551 }
  0x89   :  { %v56_v9 = vmul.f32 %v552_v8, %v53_v4  ;;  %v554_v13 = vpop.eup %553  ;;  %vm62_vm4 = vweird.f32 %v552_v8  ;;  %v376_v4 = vld [vmem:[%s923_s7 + $0x38] sm:$0xff] }
  0x8a   :  { %v66_v15 = vmul.f32 %v554_v13, %v54_v7  ;;  %vm63_vm5 = vmor %vm61_vm3, %vm62_vm4  ;;  %vm72_vm7 = vweird.f32 %v554_v13  ;;  %v556_v29 = vpop.eup %555  ;;  %v372_v7 = vld [vmem:[%s923_s7 + $0x18] sm:$0xff] }
  0x8b   :  { %v57_v10 = vmul.f32 %v552_v8, %v56_v9  ;;  %vm73_vm8 = vmor %vm71_vm6, %vm72_vm7  ;;  %v204_v31 = vmul.f32 128.0, %v556_v29  ;;  %vm208_vm9 = vweird.f32 %v556_v29  ;;  %v370_v9 = vld [vmem:[%s923_s7 + $0x8] sm:$0xff] }
  0x8c   :  { %v67_v17 = vmul.f32 %v554_v13, %v66_v15 }
  0x8d   :  { %v58_v14 = vmul.f32 0.5, %v57_v10  ;;  %v369_v10 = vld [vmem:[%s923_s7] sm:$0xff] }
  0x8e   :  { %v68_v18 = vmul.f32 0.5, %v67_v17 }
  0x8f   :  { %v59_v16 = vsub.f32 1.5, %v58_v14 }
  0x90   :  { %v69_v22 = vsub.f32 1.5, %v68_v18 }
  0x91   :  { %v60_v19 = vmul.f32 %v552_v8, %v59_v16 }
  0x92   :  { %v70_v26 = vmul.f32 %v554_v13, %v69_v22 }
  0x93   :  { %v64_v20 = vsel %vm63_vm5, %v552_v8, %v60_v19  ;;  %v371_v8 = vld [vmem:[%s923_s7 + $0x10] sm:$0xff] }
  0x94   :  { %v75_v21 = vmul.f32 %v64_v20, %v688_v11  ;;  %v74_v11 = vsel %vm73_vm8, %v554_v13, %v70_v26  ;;  %v354_v13 = vld [vmem:[%s922_s6] sm:$0x1] }
  0x95   :  { %v76_v27 = vmul.f32 %v74_v11, %v693_v12  ;;  %v236_v12 = vld [vmem:[%s921_s5] sm:$0xff]  ;;  %v355_v14 = vmul.f32 0.01, %v354_v13 }
  0x96   :  { %541 = vmatmul.msk.f32.vlgmr.msra.gmra.mxu2 %vm37_vm1, %v75_v21  ;;  %267 = vmatpush.xpose.msra.mxu1 %v236_v12 }
  0x97   :  { %v357_v18 = vperm.slane %v355_v14, 0 }
  0x9e   :  { %542 = vmatmul.msk.f32.gmra.mxu2 %vm37_vm1, %v76_v27 }
  0xbe   :  { %v183_v35 = vpop.f32.mrf.mxu0 }
  0xbf   :  { %v189_v36 = vmul.f32 0.35355338, %v183_v35 }
  0xc1   :  { %v771_v38 = vadd.f32 %v548_v33, %v189_v36 }
  0xc3   :  { %v197_v40 = vmul.f32 %v771_v38, %v771_v38 }
  0xc5   :  { %199 = vadd.xlane.f32.xlu0 %v197_v40  ;;  %v384_v40 = vld [vmem:[%s923_s7 + $0x78] sm:$0xff] }
  0xc6   :  { %v186_v43 = vpop.f32.mrf.mxu0  ;;  %385 = vmatpush.xpose.msra.mxu3 %v384_v40 }
  0xc7   :  { %v190_v44 = vmul.f32 0.35355338, %v186_v43  ;;  %v382_v43 = vld [vmem:[%s923_s7 + $0x68] sm:$0xff] }
  0xc9   :  { %v789_v46 = vadd.f32 %v548_v33, %v190_v44  ;;  %v205_v33 = vsub.f32 1.0, %v204_v31  ;;  %v410_v31 = vld [vmem:[%s924_s8] sm:$0x1]  ;;  %s589_s8 = smov [#allocation2]  }
  0xca   :  { %386 = vmatpush.xpose.msra.mxu3 %v383_v42  ;;  %v411_v32 = vmul.f32 0.01, %v410_v31  ;;  %s493_s24 = sshll.u32 %s589_s8, 4  ;;  %s494_s24 = int_to_ptr.vmem [resolvable:$true] %s493_s24 }
  0xcb   :  { %v198_v48 = vmul.f32 %v789_v46, %v789_v46  ;;  %v206_v34 = vmul.f32 %v556_v29, %v205_v33 }
  0xcc   :  { %v413_v33 = vperm.slane %v411_v32, 0 }
  0xcd   :  { %201 = vadd.xlane.f32.xlu1 %v198_v48  ;;  %v207_v35 = vadd.f32 %v556_v29, %v206_v34 }
  0xce   :  { %387 = vmatpush.xpose.msra.mxu3 %v382_v43 }
  0xcf   :  { %v209_v36 = vsel %vm208_vm9, %v556_v29, %v207_v35 }
  0xd2   :  { %388 = vmatpush.xpose.msra.mxu3 %v381_v49 }
  0xd6   :  { %389 = vmatpush.xpose.msra.mxu3 %v380_v52 }
  0xda   :  { %390 = vmatpush.xpose.msra.mxu3 %v379_v56 }
  0xde   :  { %391 = vmatpush.xpose.msra.mxu3 %v378_v62 }
  0xe2   :  { %392 = vmatpush.xpose.msra.mxu3 %v377_v1 }
  0xe6   :  { %393 = vmatpush.xpose.msra.mxu3 %v376_v4 }
  0xea   :  { %394 = vmatpush.xpose.msra.mxu3 %v375_v5 }
  0xee   :  { %395 = vmatpush.xpose.msra.mxu3 %v374_v6 }
 0x119   :  { %v346_v15 = vpop.f32.mrf.mxu2 }
 0x121   :  { %v349_v22 = vpop.f32.mrf.mxu2 }
 0x138   :  { %v200_v37 = vpop.xlane.xlu0 %199 }
 0x139   :  { %v210_v39 = vmul.f32 %v209_v36, %v200_v37 }
 0x13b   :  { %v212_v41 = vadd.f32 1e-08, %v210_v39 }
 0x13d   :  { %557 = vrsqrt.f32 %v212_v41  ;;  %vm220_vm11 = vweird.f32 %v212_v41 }
 0x140   :  { %v202_v44 = vpop.xlane.xlu1 %201 }
 0x141   :  { %v211_v45 = vmul.f32 %v209_v36, %v202_v44 }
 0x143   :  { %v558_v47 = vpop.eup %557  ;;  %v213_v48 = vadd.f32 1e-08, %v211_v45 }
 0x144   :  { %v215_v50 = vmul.f32 %v558_v47, %v212_v41  ;;  %vm221_vm10 = vweird.f32 %v558_v47 }
 0x145   :  { %559 = vrsqrt.f32 %v213_v48  ;;  %vm222_vm12 = vmor %vm220_vm11, %vm221_vm10  ;;  %vm230_vm14 = vweird.f32 %v213_v48 }
 0x146   :  { %v216_v51 = vmul.f32 %v558_v47, %v215_v50 }
 0x148   :  { %v217_v53 = vmul.f32 0.5, %v216_v51 }
 0x14a   :  { %v218_v54 = vsub.f32 1.5, %v217_v53 }
 0x14b   :  { %v560_v55 = vpop.eup %559 }
 0x14c   :  { %v225_v57 = vmul.f32 %v560_v55, %v213_v48  ;;  %v219_v58 = vmul.f32 %v558_v47, %v218_v54  ;;  %vm231_vm13 = vweird.f32 %v560_v55 }
 0x14d   :  { %vm232_vm15 = vmor %vm230_vm14, %vm231_vm13 }
 0x14e   :  { %v226_v59 = vmul.f32 %v560_v55, %v225_v57  ;;  %v223_v60 = vsel %vm222_vm12, %v558_v47, %v219_v58 }
 0x14f   :  { %v234_v61 = vmul.f32 %v223_v60, %v771_v38 }
 0x150   :  { %v227_v63 = vmul.f32 0.5, %v226_v59 }
 0x151   :  { %268 = vmatmul.f32.vlgmr.msra.gmra.mxu1 %v234_v61 }
 0x152   :  { %v228_v0 = vsub.f32 1.5, %v227_v63 }
 0x154   :  { %v229_v2 = vmul.f32 %v560_v55, %v228_v0 }
 0x156   :  { %v233_v3 = vsel %vm232_vm15, %v560_v55, %v229_v2 }
 0x157   :  { %v235_v38 = vmul.f32 %v233_v3, %v789_v46  ;;  %v373_v46 = vld [vmem:[%s923_s7 + $0x20] sm:$0xff] }
 0x158   :  { %396 = vmatpush.xpose.msra.mxu3 %v373_v46 }
 0x159   :  { %271 = vmatmul.f32.gmra.mxu1 %v235_v38 }
 0x15c   :  { %397 = vmatpush.xpose.msra.mxu3 %v372_v7 }
 0x160   :  { %398 = vmatpush.xpose.msra.mxu3 %v371_v8 }
 0x164   :  { %399 = vmatpush.xpose.msra.mxu3 %v370_v9 }
 0x168   :  { %400 = vmatpush.xpose.msra.mxu3 %v369_v10 }
 0x1ce   :  { %v269_v16 = vpop.f32.mrf.mxu1 }
 0x1cf   :  { %v347_v17 = vadd.f32 %v346_v15, %v269_v16 }
 0x1d1   :  { %v352_v19 = vmul.f32 0.00072168786, %v347_v17 }
 0x1d3   :  { %v359_v20 = vadd.f32 %v357_v18, %v352_v19 }
 0x1d5   :  { %vm361_vm0 = vcmp.ge.f32.partialorder %v359_v20, 0.0  ;;  %v363_v21 = vmul.f32 0.2, %v359_v20 }
 0x1d6   :  { %v272_v23 = vpop.f32.mrf.mxu1 }
 0x1d7   :  { %v350_v24 = vadd.f32 %v349_v22, %v272_v23  ;;  %v365_v25 = vsel %vm361_vm0, %v359_v20, %v363_v21 }
 0x1d8   :  { %v367_v26 = vmul.f32 1.4142135, %v365_v25 }
 0x1d9   :  { %v353_v11 = vmul.f32 0.00072168786, %v350_v24 }
 0x1da   :  { %401 = vmatmul.f32.vlgmr.msra.gmra.mxu3 %v367_v26 }
 0x1db   :  { %v360_v27 = vadd.f32 %v357_v18, %v353_v11 }
 0x1dd   :  { %vm362_vm1 = vcmp.ge.f32.partialorder %v360_v27, 0.0  ;;  %v364_v28 = vmul.f32 0.2, %v360_v27 }
 0x1df   :  { %v366_v29 = vsel %vm362_vm1, %v360_v27, %v364_v28 }
 0x1e0   :  { %v368_v30 = vmul.f32 1.4142135, %v366_v29 }
 0x1e2   :  { %404 = vmatmul.f32.gmra.mxu3 %v368_v30 }
 0x25d   :  { %v402_v12 = vpop.f32.mrf.mxu3 }
 0x25e   :  { %v408_v34 = vmul.f32 0.00088388345, %v402_v12 }
 0x260   :  { %v415_v35 = vadd.f32 %v413_v33, %v408_v34 }
 0x262   :  { %vm417_vm2 = vcmp.ge.f32.partialorder %v415_v35, 0.0  ;;  %v419_v36 = vmul.f32 0.2, %v415_v35 }
 0x264   :  { %v421_v37 = vsel %vm417_vm2, %v415_v35, %v419_v36 }
 0x265   :  { %v423_v39 = vmul.f32 1.4142135, %v421_v37  ;;  %v405_v40 = vpop.f32.mrf.mxu3 }
 0x266   :  { %v409_v41 = vmul.f32 0.00088388345, %v405_v40 }
 0x267   :  { %v427_v42 = vrot.slane %v423_v39, 1  ;;  %v428_v43 = vrot.slane %v423_v39, 2  ;;  %v429_v44 = vrot.slane %v423_v39, 3  ;;  %v430_v45 = vrot.slane %v423_v39, 4 }
 0x268   :  { %v431_v47 = vrot.slane %v423_v39, 5  ;;  %v432_v48 = vrot.slane %v423_v39, 6  ;;  %v441_v49 = vperm.slane %v423_v39, 0  ;;  %v433_v50 = vrot.slane %v423_v39, 7 }
 0x269   :  { %v442_v51 = vperm.slane %v427_v42, 0  ;;  %v443_v52 = vperm.slane %v428_v43, 0  ;;  %v444_v53 = vperm.slane %v429_v44, 0  ;;  %v445_v54 = vperm.slane %v430_v45, 0 }
 0x26a   :  { %473 = vst [vmem:[#allocation2] sm:$0xf] %v441_v49  ;;  %v416_v55 = vadd.f32 %v413_v33, %v409_v41  ;;  %v446_v56 = vperm.slane %v431_v47, 0  ;;  %v447_v57 = vperm.slane %v432_v48, 0  ;;  %v448_v59 = vperm.slane %v433_v50, 0 }
 0x26b   :  { %474 = vst [vmem:[#allocation2 + $0x4] sm:$0xf] %v442_v51 }
 0x26c   :  { %475 = vst [vmem:[#allocation2 + $0x8] sm:$0xf] %v443_v52  ;;  %vm418_vm3 = vcmp.ge.f32.partialorder %v416_v55, 0.0  ;;  %v420_v58 = vmul.f32 0.2, %v416_v55 }
 0x26d   :  { %476 = vst [vmem:[#allocation2 + $0xc] sm:$0xf] %v444_v53 }
 0x26e   :  { %477 = vst [vmem:[#allocation2 + $0x10] sm:$0xf] %v445_v54  ;;  %v422_v60 = vsel %vm418_vm3, %v416_v55, %v420_v58 }
 0x26f   :  { %478 = vst [vmem:[#allocation2 + $0x14] sm:$0xf] %v446_v56  ;;  %v424_v61 = vmul.f32 1.4142135, %v422_v60 }
 0x270   :  { %479 = vst [vmem:[#allocation2 + $0x18] sm:$0xf] %v447_v57 }
 0x271   :  { %480 = vst [vmem:[#allocation2 + $0x1c] sm:$0xf] %v448_v59  ;;  %v434_v62 = vrot.slane %v424_v61, 1  ;;  %v435_v63 = vrot.slane %v424_v61, 2  ;;  %v436_v0 = vrot.slane %v424_v61, 3  ;;  %v437_v1 = vrot.slane %v424_v61, 4 }
 0x272   :  { %v438_v2 = vrot.slane %v424_v61, 5  ;;  %v439_v3 = vrot.slane %v424_v61, 6  ;;  %v449_v38 = vperm.slane %v424_v61, 0  ;;  %v440_v4 = vrot.slane %v424_v61, 7 }
 0x273   :  { %v450_v5 = vperm.slane %v434_v62, 0  ;;  %v451_v6 = vperm.slane %v435_v63, 0  ;;  %v452_v46 = vperm.slane %v436_v0, 0  ;;  %v453_v7 = vperm.slane %v437_v1, 0 }
 0x274   :  { %481 = vst [vmem:[#allocation2 + $0x20] sm:$0xf] %v449_v38  ;;  %v454_v8 = vperm.slane %v438_v2, 0  ;;  %v455_v9 = vperm.slane %v439_v3, 0  ;;  %v456_v10 = vperm.slane %v440_v4, 0 }
 0x275   :  { %482 = vst [vmem:[#allocation2 + $0x24] sm:$0xf] %v450_v5 }
 0x276   :  { %483 = vst [vmem:[#allocation2 + $0x28] sm:$0xf] %v451_v6 }
 0x277   :  { %484 = vst [vmem:[#allocation2 + $0x2c] sm:$0xf] %v452_v46 }
 0x278   :  { %485 = vst [vmem:[#allocation2 + $0x30] sm:$0xf] %v453_v7 }
 0x279   :  { %486 = vst [vmem:[#allocation2 + $0x34] sm:$0xf] %v454_v8 }
 0x27a   :  { %487 = vst [vmem:[#allocation2 + $0x38] sm:$0xf] %v455_v9 }
 0x27b   :  { %488 = vst [vmem:[#allocation2 + $0x3c] sm:$0xf] %v456_v10 }
 0x27c   :  { %501 = dma.vmem_to_hbm [thread:$0]  %s494_s24, 1024, %s496_s27, [#allocation3], %s590_s28, %s590_s28, %s591_s3  }
 0x27d   :  { %585 = dma.done.wait [#allocation3], 1024  }
 0x27e   :  { %586 = vsyncadd [#allocation3], 4294966272 }
 0x27f   :  { %506 = vsyncpa [#allocation3], 1 }

</bundles_post_ra>
